<compile_context>
chip_gen: v6e
topology: v6e:2x2x1
jax: 0.10.0
libtpu: 0.0.40
codegen_flags: <defaults>
</compile_context>

<pallas_src>
import functools

import jax
import jax.numpy as jnp
from jax.experimental import pallas as pl
from jax.experimental.pallas import tpu as pltpu

_NEG_BIG = -1e30  # finite "minus infinity" for padded vocab columns (avoids inf-inf NaNs)


def _round_up(x: int, m: int) -> int:
    return ((x + m - 1) // m) * m


def _make_final_layer_kernel(num_v: int, tile_v: int, n_buf: int, mxu_dtype):
    """Kernel for one row-tile: stream weight slabs over the vocab axis, online LSE."""

    def kernel(x_ref, b_ref, w_hbm, o_ref, w_buf, w_sem):
        # x_ref:  (tile_n, E)      VMEM (auto-pipelined)
        # b_ref:  (1, V_pad)       VMEM (resident)
        # w_hbm:  (E, V_pad)       HBM  (memory_space=pl.ANY, manually DMA'd)
        # o_ref:  (tile_n, V_pad)  VMEM output block
        # w_buf:  (n_buf, E, tile_v) VMEM scratch (weight slab double buffer)
        # w_sem:  (n_buf,)         DMA semaphores

        def slab_copy(jv, slot):
            # Strided HBM->VMEM copy of weight columns [jv*tile_v, (jv+1)*tile_v).
            # jv / slot are Python ints (static unroll) -> all slices are static.
            return pltpu.make_async_copy(
                w_hbm.at[:, jv * tile_v:(jv + 1) * tile_v],
                w_buf.at[slot],
                w_sem.at[slot],
            )

        slab_copy(0, 0).start()

        x = x_ref[...].astype(mxu_dtype)  # bf16 feed for the MXU (hoisted out of the loop)
        tile_n = x_ref.shape[0]
        m = jnp.full((tile_n, 1), -jnp.inf, dtype=jnp.float32)  # running max
        l = jnp.zeros((tile_n, 1), dtype=jnp.float32)           # running sum of exp

        for jv in range(num_v):  # static unroll over vocab slabs
            slot = jv % n_buf
            slab_copy(jv, slot).wait()
            if jv + 1 < num_v:
                slab_copy(jv + 1, (jv + 1) % n_buf).start()  # prefetch next slab

            w = w_buf[slot].astype(mxu_dtype)
            logits = jnp.dot(x, w, preferred_element_type=jnp.float32)
            logits = logits + b_ref[:, jv * tile_v:(jv + 1) * tile_v].astype(jnp.float32)

            # Online log-sum-exp update (numerically stable).
            m_new = jnp.maximum(m, jnp.max(logits, axis=-1, keepdims=True))
            l = l * jnp.exp(m - m_new) + jnp.sum(
                jnp.exp(logits - m_new), axis=-1, keepdims=True)
            m = m_new

            # Stash raw logits into the resident output block (static, lane-aligned slice).
            o_ref[:, jv * tile_v:(jv + 1) * tile_v] = logits.astype(o_ref.dtype)

        lse = m + jnp.log(l)  # global per-row log-sum-exp
        o_ref[...] = (o_ref[...].astype(jnp.float32) - lse).astype(o_ref.dtype)

    return kernel


@functools.partial(jax.jit, static_argnames=("tile_n", "tile_v", "mxu_dtype",
                                             "vmem_budget_bytes"))
def transformer_final_layer(src, weight, bias, *, tile_n=256, tile_v=512,
                            mxu_dtype=jnp.bfloat16,
                            vmem_budget_bytes=64 << 20):
    """log_softmax(src @ weight + bias, axis=-1).

    src:    (B, S, E)
    weight: (E, V)   -- transpose of torch's nn.Linear weight (V, E)
    bias:   (V,)
    returns (B, S, V) log-probabilities in src.dtype.
    """
    B, S, E = src.shape
    Ew, V = weight.shape
    assert Ew == E and bias.shape == (V,)
    assert tile_n % 8 == 0 and tile_v % 128 == 0

    N = B * S
    itemsize = jnp.dtype(src.dtype).itemsize
    w_itemsize = jnp.dtype(weight.dtype).itemsize

    # ---- vocab tiling: lane-dense slabs, pad V up to a multiple of tile_v ----
    tile_v_eff = min(tile_v, _round_up(V, 128))
    V_pad = _round_up(V, tile_v_eff)
    num_v = V_pad // tile_v_eff
    n_buf = 2 if num_v > 1 else 1

    # ---- row tiling: feed the MXU, but respect the VMEM budget ----
    tile_n_eff = min(tile_n, _round_up(N, 8))

    def footprint(tn):
        return (2 * tn * E * itemsize                # x block (double-buffered)
                + 2 * tn * V_pad * itemsize          # output block (double-buffered)
                + 2 * V_pad * itemsize               # bias block
                + n_buf * E * tile_v_eff * w_itemsize)  # weight slab buffers

    while tile_n_eff > 8 and footprint(tile_n_eff) > vmem_budget_bytes:
        tile_n_eff = max(8, _round_up(tile_n_eff // 2, 8))

    N_pad = _round_up(N, tile_n_eff)
    num_n = N_pad // tile_n_eff

    vmem_limit = min(100 << 20,
                     max(32 << 20, int(1.5 * footprint(tile_n_eff)) + (8 << 20)))

    # ---- pad operands (padded rows = 0, padded vocab columns get a -1e30 bias) ----
    x2d = src.reshape(N, E)
    if N_pad != N:
        x2d = jnp.pad(x2d, ((0, N_pad - N), (0, 0)))
    w_p = weight if V_pad == V else jnp.pad(weight, ((0, 0), (0, V_pad - V)))
    if V_pad == V:
        b_p = bias
    else:
        b_p = jnp.pad(bias, (0, V_pad - V), constant_values=_NEG_BIG)
    b2d = b_p.reshape(1, V_pad)

    out = pl.pallas_call(
        _make_final_layer_kernel(num_v, tile_v_eff, n_buf, mxu_dtype),
        out_shape=jax.ShapeDtypeStruct((N_pad, V_pad), src.dtype),
        grid_spec=pltpu.PrefetchScalarGridSpec(
            num_scalar_prefetch=0,
            grid=(num_n,),
            in_specs=[
                pl.BlockSpec((tile_n_eff, E), lambda i: (i, 0)),   # activations
                pl.BlockSpec((1, V_pad), lambda i: (0, 0)),        # bias (resident)
                pl.BlockSpec(memory_space=pl.ANY),                 # weight stays in HBM
            ],
            out_specs=pl.BlockSpec((tile_n_eff, V_pad), lambda i: (i, 0)),
            scratch_shapes=[
                pltpu.VMEM((n_buf, E, tile_v_eff), weight.dtype),  # weight slab buffers
                pltpu.SemaphoreType.DMA((n_buf,)),
            ],
        ),
        compiler_params=pltpu.CompilerParams(
            dimension_semantics=("parallel",),   # rows split across v7x TensorCores
            vmem_limit_bytes=vmem_limit,
        ),
    )(x2d, b2d, w_p)

    return out[:N, :V].reshape(B, S, V)


if __name__ == "__main__":
    def reference(src, w, b):
        return jax.nn.log_softmax(src @ w + b, axis=-1)

    key = jax.random.PRNGKey(0)

    # ---- Config 1: toy shapes from the module (single vocab slab, no padding) ----
    B, S, E, V = 2, 8, 32, 64
    k1, k2, k3, key = jax.random.split(key, 4)
    src = jax.random.normal(k1, (B, S, E), dtype=jnp.float32)
    bound = 1.0 / (E ** 0.5)
    w = jax.random.uniform(k2, (E, V), jnp.float32, minval=-bound, maxval=bound)
    b = jax.random.uniform(k3, (V,), jnp.float32, minval=-bound, maxval=bound)

    out = jax.block_until_ready(transformer_final_layer(src, w, b))  # bf16 MXU path
    ref = reference(src, w, b)
    assert out.shape == (B, S, V)
    assert jnp.allclose(out, ref, atol=2e-2, rtol=0), "cfg1 bf16 path mismatch"

    out_f32 = jax.block_until_ready(
        transformer_final_layer(src, w, b, mxu_dtype=jnp.float32))
    assert jnp.allclose(out_f32, ref, atol=2e-4, rtol=0), "cfg1 f32 path mismatch"

    # ---- Config 2: forces row padding, vocab padding, multiple weight slabs and
    #      the double-buffered DMA path (N=46 -> pad 48, V=300 -> pad 384, 3 slabs) ----
    B2, S2, E2, V2 = 2, 23, 32, 300
    k1, k2, k3, key = jax.random.split(key, 4)
    src2 = jax.random.normal(k1, (B2, S2, E2), dtype=jnp.float32)
    bound2 = 1.0 / (E2 ** 0.5)
    w2 = jax.random.uniform(k2, (E2, V2), jnp.float32, minval=-bound2, maxval=bound2)
    b2 = jax.random.uniform(k3, (V2,), jnp.float32, minval=-bound2, maxval=bound2)

    out2 = jax.block_until_ready(
        transformer_final_layer(src2, w2, b2, tile_n=16, tile_v=128))
    ref2 = reference(src2, w2, b2)
    assert out2.shape == (B2, S2, V2)
    assert jnp.allclose(out2, ref2, atol=2e-2, rtol=0), "cfg2 bf16 path mismatch"

    out2_f32 = jax.block_until_ready(
        transformer_final_layer(src2, w2, b2, tile_n=16, tile_v=128,
                                mxu_dtype=jnp.float32))
    assert jnp.allclose(out2_f32, ref2, atol=2e-4, rtol=0), "cfg2 f32 path mismatch"

    print("KERNEL_OK")
</pallas_src>

<mosaic_0001>
module attributes {stable_mosaic.version = 11 : i64} {
  func.func @kernel(%arg0: i32, %arg1: memref<16x32xf32, #tpu.memory_space<vmem>>, %arg2: memref<1x128xf32, #tpu.memory_space<vmem>>, %arg3: memref<32x128xf32, #tpu.memory_space<any>>, %arg4: memref<16x128xf32, #tpu.memory_space<vmem>>, %arg5: memref<1x32x128xf32, #tpu.memory_space<vmem>>, %arg6: memref<1x!tpu.dma_semaphore, #tpu.memory_space<semaphore_mem>>) attributes {dimension_semantics = [#tpu.dimension_semantics<parallel>], iteration_bounds = array<i64: 1>, scalar_prefetch = 0 : i64, scratch_operands = 2 : i64, tpu.core_type = #tpu.core_type<tc>, window_params = [{transform_indices = @transform_0, window_bounds = array<i64: 16, 32>}, {pipeline_mode = #tpu.pipeline_mode<synchronous>, transform_indices = @transform_1, window_bounds = array<i64: 1, 128>}, {}, {transform_indices = @transform_3, window_bounds = array<i64: 16, 128>}]} {
    %c0_i32 = arith.constant 0 : i32
    %c0_i32_0 = arith.constant 0 : i32
    %c0_i32_1 = arith.constant 0 : i32
    %c0_i32_2 = arith.constant 0 : i32
    %0 = tpu.memref_slice %arg3[%c0_i32_1, %c0_i32_2] : memref<32x128xf32, #tpu.memory_space<any>> -> memref<32x128xf32, #tpu.memory_space<any>>
    %c0_i32_3 = arith.constant 0 : i32
    %c0_i32_4 = arith.constant 0 : i32
    %1 = tpu.memref_slice %arg5[%c0_i32, %c0_i32_3, %c0_i32_4] : memref<1x32x128xf32, #tpu.memory_space<vmem>> -> memref<1x32x128xf32, #tpu.memory_space<vmem>>
    %2 = tpu.memref_squeeze %1 : memref<1x32x128xf32, #tpu.memory_space<vmem>> -> memref<32x128xf32, #tpu.memory_space<vmem>>
    %3 = tpu.memref_slice %arg6[%c0_i32_0] : memref<1x!tpu.dma_semaphore, #tpu.memory_space<semaphore_mem>> -> memref<1x!tpu.dma_semaphore, #tpu.memory_space<semaphore_mem>>
    %4 = tpu.memref_squeeze %3 : memref<1x!tpu.dma_semaphore, #tpu.memory_space<semaphore_mem>> -> memref<!tpu.dma_semaphore, #tpu.memory_space<semaphore_mem>>
    tpu.enqueue_dma source(%0 : memref<32x128xf32, #tpu.memory_space<any>>) target(%2 : memref<32x128xf32, #tpu.memory_space<vmem>>) target_semaphore(%4 : memref<!tpu.dma_semaphore, #tpu.memory_space<semaphore_mem>>)
    %c0 = arith.constant 0 : index
    %c0_5 = arith.constant 0 : index
    %5 = vector.load %arg1[%c0, %c0_5] : memref<16x32xf32, #tpu.memory_space<vmem>>, vector<16x32xf32>
    %6 = arith.truncf %5 : vector<16x32xf32> to vector<16x32xbf16>
    %cst = arith.constant 0xFF800000 : f32
    %7 = vector.broadcast %cst : f32 to vector<16x1xf32>
    %cst_6 = arith.constant 0.000000e+00 : f32
    %8 = vector.broadcast %cst_6 : f32 to vector<16x1xf32>
    %c0_i32_7 = arith.constant 0 : i32
    %c0_i32_8 = arith.constant 0 : i32
    %c0_i32_9 = arith.constant 0 : i32
    %c0_i32_10 = arith.constant 0 : i32
    %9 = tpu.memref_slice %arg3[%c0_i32_9, %c0_i32_10] : memref<32x128xf32, #tpu.memory_space<any>> -> memref<32x128xf32, #tpu.memory_space<any>>
    %c0_i32_11 = arith.constant 0 : i32
    %c0_i32_12 = arith.constant 0 : i32
    %10 = tpu.memref_slice %arg5[%c0_i32_7, %c0_i32_11, %c0_i32_12] : memref<1x32x128xf32, #tpu.memory_space<vmem>> -> memref<1x32x128xf32, #tpu.memory_space<vmem>>
    %11 = tpu.memref_squeeze %10 : memref<1x32x128xf32, #tpu.memory_space<vmem>> -> memref<32x128xf32, #tpu.memory_space<vmem>>
    %12 = tpu.memref_slice %arg6[%c0_i32_8] : memref<1x!tpu.dma_semaphore, #tpu.memory_space<semaphore_mem>> -> memref<1x!tpu.dma_semaphore, #tpu.memory_space<semaphore_mem>>
    %13 = tpu.memref_squeeze %12 : memref<1x!tpu.dma_semaphore, #tpu.memory_space<semaphore_mem>> -> memref<!tpu.dma_semaphore, #tpu.memory_space<semaphore_mem>>
    tpu.wait_dma2 semaphore(%13 : memref<!tpu.dma_semaphore, #tpu.memory_space<semaphore_mem>>) src(%9 : memref<32x128xf32, #tpu.memory_space<any>>) dst(%11 : memref<32x128xf32, #tpu.memory_space<vmem>>)
    %c0_13 = arith.constant 0 : index
    %c0_14 = arith.constant 0 : index
    %c0_15 = arith.constant 0 : index
    %14 = vector.load %arg5[%c0_13, %c0_14, %c0_15] : memref<1x32x128xf32, #tpu.memory_space<vmem>>, vector<1x32x128xf32>
    %15 = vector.shape_cast %14 : vector<1x32x128xf32> to vector<32x128xf32>
    %16 = arith.truncf %15 : vector<32x128xf32> to vector<32x128xbf16>
    %cst_16 = arith.constant dense<0.000000e+00> : vector<16x128xf32>
    %17 = tpu.matmul %6, %16, %cst_16 {dimension_numbers = #tpu.dot_dimension_numbers<[1], [0], [0], [1], [0, 0, 1, 1], [], []>} : vector<16x32xbf16>, vector<32x128xbf16>, vector<16x128xf32> -> vector<16x128xf32>
    %c0_17 = arith.constant 0 : index
    %c0_18 = arith.constant 0 : index
    %18 = vector.load %arg2[%c0_17, %c0_18] : memref<1x128xf32, #tpu.memory_space<vmem>>, vector<1x128xf32>
    %19 = vector.broadcast %18 : vector<1x128xf32> to vector<16x128xf32>
    %20 = arith.addf %17, %19 : vector<16x128xf32>
    %cst_19 = arith.constant dense<0xFF800000> : vector<16xf32>
    %21 = vector.multi_reduction <maximumf>, %20, %cst_19 [1] : vector<16x128xf32> to vector<16xf32>
    %22 = vector.shape_cast %21 : vector<16xf32> to vector<16x1xf32>
    %23 = arith.maximumf %7, %22 : vector<16x1xf32>
    %24 = arith.subf %7, %23 : vector<16x1xf32>
    %25 = math.exp %24 : vector<16x1xf32>
    %26 = arith.mulf %8, %25 : vector<16x1xf32>
    %27 = vector.broadcast %23 : vector<16x1xf32> to vector<16x128xf32>
    %28 = arith.subf %20, %27 : vector<16x128xf32>
    %29 = math.exp %28 : vector<16x128xf32>
    %cst_20 = arith.constant dense<0.000000e+00> : vector<16xf32>
    %30 = vector.multi_reduction <add>, %29, %cst_20 [1] : vector<16x128xf32> to vector<16xf32>
    %31 = vector.shape_cast %30 : vector<16xf32> to vector<16x1xf32>
    %32 = arith.addf %26, %31 : vector<16x1xf32>
    %c0_21 = arith.constant 0 : index
    %c0_22 = arith.constant 0 : index
    %33 = vector.load %arg4[%c0_21, %c0_22] : memref<16x128xf32, #tpu.memory_space<vmem>>, vector<16x128xf32>
    tpu.vector_store %arg4[%c0_21, %c0_22], %20 {strides = array<i32>} : memref<16x128xf32, #tpu.memory_space<vmem>>, vector<16x128xf32>,
    %34 = math.log %32 : vector<16x1xf32>
    %35 = arith.addf %23, %34 : vector<16x1xf32>
    %c0_23 = arith.constant 0 : index
    %c0_24 = arith.constant 0 : index
    %36 = vector.load %arg4[%c0_23, %c0_24] : memref<16x128xf32, #tpu.memory_space<vmem>>, vector<16x128xf32>
    %37 = vector.broadcast %35 : vector<16x1xf32> to vector<16x128xf32>
    %38 = arith.subf %36, %37 : vector<16x128xf32>
    %c0_25 = arith.constant 0 : index
    %c0_26 = arith.constant 0 : index
    %39 = vector.load %arg4[%c0_25, %c0_26] : memref<16x128xf32, #tpu.memory_space<vmem>>, vector<16x128xf32>
    tpu.vector_store %arg4[%c0_25, %c0_26], %38 {strides = array<i32>} : memref<16x128xf32, #tpu.memory_space<vmem>>, vector<16x128xf32>,
    return
  }
  func.func @transform_0(%arg0: i32) -> (i32, i32) {
    %c0_i32 = arith.constant 0 : i32
    %c0_i32_0 = arith.constant 0 : i32
    return %arg0, %c0_i32 : i32, i32
  }
  func.func @transform_1(%arg0: i32) -> (i32, i32) {
    %c0_i32 = arith.constant 0 : i32
    %c0_i32_0 = arith.constant 0 : i32
    %c0_i32_1 = arith.constant 0 : i32
    return %c0_i32, %c0_i32_0 : i32, i32
  }
  func.func @transform_3(%arg0: i32) -> (i32, i32) {
    %c0_i32 = arith.constant 0 : i32
    %c0_i32_0 = arith.constant 0 : i32
    return %arg0, %c0_i32 : i32, i32
  }
}

</mosaic_0001>

<bundles_post_ra>
// kernel: transformer_final_layer.1
= control target key start
LH: loop header
LB: loop body
LE: loop exit
PB: predicated region body
PF: predicated region fallthrough
CT: control target
= control target key end

     0   :  { %s261_s0 = inlined_call_operand.vmem [shape: f32[16,32], index: 0, kind: input, shape index: {}]   ;;  %s262_s1 = inlined_call_operand.vmem [shape: f32[1,128], index: 1, kind: input, shape index: {}]   ;;  %s263_s2 = inlined_call_operand.vmem [shape: f32[32,128], index: 2, kind: input, shape index: {}]   ;;  %s264_s3 = inlined_call_operand.vmem [shape: f32[16,128], index: 3, kind: output, shape index: {}]  }
   0x1   :  { %v46_v0 = vld [vmem:[%s263_s2] sm:$0xff]  ;;  %v48_v1 = vld [vmem:[%s263_s2 + $0x8] sm:$0xff]  ;;  %v50_v2 = vld [vmem:[%s263_s2 + $0x10] sm:$0xff] }
   0x2   :  { %v52_v3 = vld [vmem:[%s263_s2 + $0x18] sm:$0xff] }
   0x3   :  { %61 = vsyncadd [#allocation3], 512  ;;  %v62_v4 = vld [vmem:[%s261_s0] sm:$0xff]  ;;  %v63_v5 = vld [vmem:[%s261_s0 + $0x8] sm:$0xff]  ;;  %v73_v7 = vpack.c.bf16 %v52_v3, %v50_v2 }
   0x4   :  { %v64_v6 = vpack.c.bf16 %v63_v5, %v62_v4 }
   0x5   :  { %210 = dma.done.wait [#allocation3], 512 }
   0x6   :  { %211 = vsyncadd [#allocation3], 4294966784  ;;  %v212_v8 = vmov 0.0   ;;  %vm213_vm0 = vmmov 0   ;;  %v72_v9 = vpack.c.bf16 %v48_v1, %v46_v0  ;;  %vm81_vm1 = vcmask 261120  }
   0x7   :  { %188 = vmatprep.subr.bf16.mxu0 %v212_v8  ;;  %192 = vmatprep.mubr.msk.bf16.mxu0 %vm213_vm0, %v212_v8  ;;  %v182_v10 = vld [vmem:[%s262_s1] ss:$0 sm:$0xff] }
   0x8   :  { %189 = vmatpush3.bf16.msra.mxu0 %v73_v7 }
   0x9   :  { %190 = vmatprep.subr.bf16.mxu0 %v212_v8 }
   0xc   :  { %191 = vmatpush3.bf16.msra.mxu0 %v72_v9 }
   0xf   :  { %193 = vmatmul.mubr.msk.bf16.vlgmr.msra.gmra.mxu0 %vm81_vm1, %v64_v6 }
  0xcf   :  { %v119_v11 = vpop.f32.mrf.mxu0 }
  0xd0   :  { %v120_v12 = vadd.f32 %v182_v10, %v119_v11 }
  0xd1   :  { %v194_v13 = vpop.f32.mrf.mxu0 }
  0xd2   :  { %126 = vmax.xlane.f32.xlu0 %v120_v12 }
  0xd3   :  { %v122_v14 = vpop.f32.mrf.mxu0 }
  0xd4   :  { %v123_v15 = vadd.f32 %v182_v10, %v122_v14 }
  0xd5   :  { %v195_v16 = vpop.f32.mrf.mxu0 }
  0xd6   :  { %128 = vmax.xlane.f32.xlu0 %v123_v15 }
 0x15b   :  { %v127_v17 = vpop.xlane.xlu0 %126 }
 0x15c   :  { %v138_v18 = vsub.f32 %v120_v12, %v127_v17  ;;  %v130_v25 = vsub.f32 -inf, %v127_v17 }
 0x15e   :  { %v140_v19 = vmul.f32 1.442695, %v138_v18  ;;  %v132_v26 = vmul.f32 1.442695, %v130_v25 }
 0x15f   :  { %v129_v20 = vpop.xlane.xlu0 %128 }
 0x160   :  { %v139_v21 = vsub.f32 %v123_v15, %v129_v20  ;;  %198 = vpow2.f32 %v140_v19  ;;  %v131_v27 = vsub.f32 -inf, %v129_v20 }
 0x162   :  { %v142_v22 = vmul.f32 1.442695, %v139_v21  ;;  %v134_v28 = vmul.f32 1.442695, %v131_v27 }
 0x164   :  { %200 = vpow2.f32 %v142_v22 }
 0x165   :  { %202 = vpow2.f32 %v132_v26 }
 0x166   :  { %204 = vpow2.f32 %v134_v28 }
 0x16d   :  { %v199_v23 = vpop.eup %198 }
 0x16e   :  { %144 = vadd.xlane.f32.xlu1 %v199_v23 }
 0x171   :  { %v201_v24 = vpop.eup %200 }
 0x172   :  { %146 = vadd.xlane.f32.xlu1 %v201_v24  ;;  %v203_v29 = vpop.eup %202 }
 0x173   :  { %v136_v30 = vmul.f32 0.0, %v203_v29  ;;  %v205_v31 = vpop.eup %204 }
 0x174   :  { %v137_v34 = vmul.f32 0.0, %v205_v31 }
 0x1f7   :  { %v145_v32 = vpop.xlane.xlu1 %144 }
 0x1f8   :  { %v148_v33 = vadd.f32 %v145_v32, %v136_v30 }
 0x1fa   :  { %206 = vlog2.f32 %v148_v33 }
 0x1fb   :  { %v147_v35 = vpop.xlane.xlu1 %146 }
 0x1fc   :  { %v149_v36 = vadd.f32 %v147_v35, %v137_v34 }
 0x1fe   :  { %208 = vlog2.f32 %v149_v36 }
 0x207   :  { %v207_v37 = vpop.eup %206 }
 0x208   :  { %v153_v38 = vmul.f32 0.6931472, %v207_v37 }
 0x20a   :  { %v156_v39 = vadd.f32 %v153_v38, %v127_v17 }
 0x20b   :  { %v209_v40 = vpop.eup %208 }
 0x20c   :  { %v160_v41 = vsub.f32 %v120_v12, %v156_v39  ;;  %v155_v42 = vmul.f32 0.6931472, %v209_v40 }
 0x20e   :  { %162 = vst [vmem:[%s264_s3] sm:$0xff] %v160_v41  ;;  %v157_v43 = vadd.f32 %v155_v42, %v129_v20 }
 0x210   :  { %v161_v44 = vsub.f32 %v123_v15, %v157_v43 }
 0x212   :  { %163 = vst [vmem:[%s264_s3 + $0x8] sm:$0xff] %v161_v44 }
 0x213   :  { %168 = vsyncmov [#allocation3] }
 0x216   :  { %s169_s27 = vpop.sfrf %168 }
 0x217   :  { %p184_p0 = scmp.ne.s32.totalorder %s169_s27, 0 }
 0x219   :  { %173 = shalt.err (%p184_p0)  }

</bundles_post_ra>
